<compile_context>
chip_gen: v5e
topology: v5e:2x2
jax: 0.10.0
libtpu: 0.0.40
codegen_flags: <defaults>
</compile_context>

<pallas_src>
import jax
import jax.numpy as jnp
from jax import lax
from jax.experimental import pallas as pl
from jax.experimental.pallas import tpu as pltpu


def _org_loss_kernel(k_ref, s_ref, o_ref):
    # k_ref: (B, N, D), s_ref: (B, M, D) in VMEM.
    # o_ref: (1,) f32 scalar output in SMEM.
    k = k_ref[...]
    s = s_ref[...]
    # mul[b] = k[b] @ s[b].T  -> (B, N, M), f32 accumulation on the MXU.
    mul = lax.dot_general(
        k,
        s,
        dimension_numbers=(((2,), (2,)), ((0,), (0,))),
        preferred_element_type=jnp.float32,
    )
    # Frobenius norm squared = sum of squares; /(48*48) fixed by the reference.
    o_ref[0] = jnp.sum(mul * mul) * (1.0 / (48.0 * 48.0))


def org_loss(map_k, map_s):
    """map_k: (B, N, 1, D), map_s: (B, M, 1, D) -> scalar f32."""
    # Drop the unit dim before the kernel: a metadata-level reshape, and it
    # keeps the kernel operands' minor dims (N/M, D) instead of (1, D).
    k = jnp.squeeze(map_k, axis=2)  # (B, N, D)
    s = jnp.squeeze(map_s, axis=2)  # (B, M, D)

    out = pl.pallas_call(
        _org_loss_kernel,
        out_shape=jax.ShapeDtypeStruct((1,), jnp.float32),
        in_specs=[
            pl.BlockSpec(memory_space=pltpu.MemorySpace.VMEM),
            pl.BlockSpec(memory_space=pltpu.MemorySpace.VMEM),
        ],
        out_specs=pl.BlockSpec(memory_space=pltpu.MemorySpace.SMEM),
    )(k, s)
    return out[0]


if __name__ == "__main__":
    key = jax.random.PRNGKey(0)
    k1, k2 = jax.random.split(key)

    # Shapes consistent with the module: the /(48*48) constant implies
    # N = M = 48 feature maps; pick B=2, D=32.
    B, N, M, D = 2, 48, 48, 32
    map_k = jax.random.normal(k1, (B, N, 1, D), dtype=jnp.float32)
    map_s = jax.random.normal(k2, (B, M, 1, D), dtype=jnp.float32)

    loss = org_loss(map_k, map_s)
    loss = jax.block_until_ready(loss)

    # Pure-JAX reference for sanity.
    kk = jnp.squeeze(map_k, axis=2)
    ss = jnp.squeeze(map_s, axis=2)
    mul = jnp.einsum("bnd,bmd->bnm", kk, ss)
    ref = jnp.sum(mul * mul) / (48.0 * 48.0)
    assert jnp.allclose(loss, ref, rtol=1e-5, atol=1e-5), (loss, ref)

    print("KERNEL_OK")
</pallas_src>

<mosaic_0001>
module attributes {stable_mosaic.version = 11 : i64} {
  func.func @_org_loss_kernel(%arg0: memref<2x48x32xf32, #tpu.memory_space<vmem>>, %arg1: memref<2x48x32xf32, #tpu.memory_space<vmem>>, %arg2: memref<1xf32, #tpu.memory_space<smem>>) attributes {dimension_semantics = [], scalar_prefetch = 0 : i64, scratch_operands = 0 : i64, tpu.core_type = #tpu.core_type<tc>} {
    %c0 = arith.constant 0 : index
    %c0_0 = arith.constant 0 : index
    %c0_1 = arith.constant 0 : index
    %0 = vector.load %arg0[%c0, %c0_0, %c0_1] : memref<2x48x32xf32, #tpu.memory_space<vmem>>, vector<2x48x32xf32>
    %c0_2 = arith.constant 0 : index
    %c0_3 = arith.constant 0 : index
    %c0_4 = arith.constant 0 : index
    %1 = vector.load %arg1[%c0_2, %c0_3, %c0_4] : memref<2x48x32xf32, #tpu.memory_space<vmem>>, vector<2x48x32xf32>
    %cst = arith.constant dense<0.000000e+00> : vector<2x48x48xf32>
    %2 = tpu.matmul %0, %1, %cst {dimension_numbers = #tpu.dot_dimension_numbers<[2], [2], [1], [1], [0, 0, 0, 1, 1, 1], [0], [0]>} : vector<2x48x32xf32>, vector<2x48x32xf32>, vector<2x48x48xf32> -> vector<2x48x48xf32>
    %3 = arith.mulf %2, %2 : vector<2x48x48xf32>
    %4 = vector.shape_cast %3 : vector<2x48x48xf32> to vector<1x2x48x48xf32>
    %cst_5 = arith.constant dense<0.000000e+00> : vector<1xf32>
    %5 = vector.multi_reduction <add>, %4, %cst_5 [1, 2, 3] : vector<1x2x48x48xf32> to vector<1xf32>
    %6 = vector.shape_cast %5 : vector<1xf32> to vector<1x1x1x1xf32>
    %7 = vector.extract %6[0, 0, 0, 0] : f32 from vector<1x1x1x1xf32>
    %cst_6 = arith.constant 4.34027781E-4 : f32
    %8 = arith.mulf %7, %cst_6 : f32
    %c0_7 = arith.constant 0 : index
    %9 = memref.load %arg2[%c0_7] : memref<1xf32, #tpu.memory_space<smem>>
    memref.store %8, %arg2[%c0_7] : memref<1xf32, #tpu.memory_space<smem>>
    return
  }
}

</mosaic_0001>

<bundles_post_ra>
// kernel: tpu_custom_call.1
= control target key start
LH: loop header
LB: loop body
LE: loop exit
PB: predicated region body
PF: predicated region fallthrough
CT: control target
= control target key end

     0   :  { %vm36_vm0 = vcmask 261120   ;;  %s434_s0 = inlined_call_operand.vmem [shape: f32[2,48,32], index: 0, kind: input, shape index: {}]   ;;  %s435_s1 = inlined_call_operand.vmem [shape: f32[2,48,32], index: 1, kind: input, shape index: {}]   ;;  %s436_s2 = inlined_call_operand.hbm [shape: f32[1], index: 2, kind: output, shape index: {}]  }
   0x1   :  { %v29_v0 = vld [vmem:[%s435_s1 + $0x28] sm:$0xff]  ;;  %v35_v1 = vld [vmem:[%s435_s1 + $0x58] sm:$0xff]  ;;  %v28_v2 = vld [vmem:[%s435_s1 + $0x20] sm:$0xff] }
   0x2   :  { %242 = vmatpush.xpose.msk.msra.mxu0 %vm36_vm0, %v29_v0  ;;  %266 = vmatpush.xpose.msk.msra.mxu2 %vm36_vm0, %v29_v0  ;;  %v34_v3 = vld [vmem:[%s435_s1 + $0x50] sm:$0xff]  ;;  %v27_v4 = vld [vmem:[%s435_s1 + $0x18] sm:$0xff] }
   0x3   :  { %254 = vmatpush.xpose.msk.msra.mxu1 %vm36_vm0, %v35_v1  ;;  %272 = vmatpush.xpose.msk.msra.mxu3 %vm36_vm0, %v35_v1 }
   0x6   :  { %243 = vmatpush.xpose.msk.msra.mxu0 %vm36_vm0, %v28_v2  ;;  %267 = vmatpush.xpose.msk.msra.mxu2 %vm36_vm0, %v28_v2 }
   0x7   :  { %255 = vmatpush.xpose.msk.msra.mxu1 %vm36_vm0, %v34_v3  ;;  %273 = vmatpush.xpose.msk.msra.mxu3 %vm36_vm0, %v34_v3 }
   0x8   :  { %7 = vsyncpa [#allocation3], 0  ;;  %v33_v5 = vld [vmem:[%s435_s1 + $0x48] sm:$0xff]  ;;  %v26_v6 = vld [vmem:[%s435_s1 + $0x10] sm:$0xff]  ;;  %vm191_vm1 = vcmask 392192   ;;  %s232_s29 = sshll.u32 %s436_s2, 4  ;;  %s233_s29 = int_to_ptr.hbm [resolvable:$true] %s232_s29 }
   0x9   :  { %v32_v7 = vld [vmem:[%s435_s1 + $0x40] sm:$0xff]  ;;  %v25_v8 = vld [vmem:[%s435_s1 + $0x8] sm:$0xff]  ;;  %v31_v9 = vld [vmem:[%s435_s1 + $0x38] sm:$0xff]  ;;  %s295_s4 = smov [#allocation2]  }
   0xa   :  { %244 = vmatpush.xpose.msk.msra.mxu0 %vm36_vm0, %v27_v4  ;;  %268 = vmatpush.xpose.msk.msra.mxu2 %vm36_vm0, %v27_v4  ;;  %v24_v10 = vld [vmem:[%s435_s1] sm:$0xff]  ;;  %v30_v11 = vld [vmem:[%s435_s1 + $0x30] sm:$0xff]  ;;  %v15_v13 = vld [vmem:[%s434_s0 + $0x18] sm:$0xff] }
   0xb   :  { %256 = vmatpush.xpose.msk.msra.mxu1 %vm36_vm0, %v33_v5  ;;  %274 = vmatpush.xpose.msk.msra.mxu3 %vm36_vm0, %v33_v5  ;;  %v12_v12 = vld [vmem:[%s434_s0] sm:$0xff]  ;;  %v18_v14 = vld [vmem:[%s434_s0 + $0x30] sm:$0xff]  ;;  %v21_v15 = vld [vmem:[%s434_s0 + $0x48] sm:$0xff] }
   0xc   :  { %v13_v16 = vld [vmem:[%s434_s0 + $0x8] sm:$0xff]  ;;  %v16_v17 = vld [vmem:[%s434_s0 + $0x20] sm:$0xff]  ;;  %v19_v18 = vld [vmem:[%s434_s0 + $0x38] sm:$0xff] }
   0xd   :  { %v22_v19 = vld [vmem:[%s434_s0 + $0x50] sm:$0xff]  ;;  %v17_v21 = vld [vmem:[%s434_s0 + $0x28] sm:$0xff]  ;;  %v20_v22 = vld [vmem:[%s434_s0 + $0x40] sm:$0xff] }
   0xe   :  { %245 = vmatpush.xpose.msk.msra.mxu0 %vm36_vm0, %v26_v6  ;;  %269 = vmatpush.xpose.msk.msra.mxu2 %vm36_vm0, %v26_v6  ;;  %v14_v20 = vld [vmem:[%s434_s0 + $0x10] sm:$0xff]  ;;  %v23_v23 = vld [vmem:[%s434_s0 + $0x58] sm:$0xff] }
   0xf   :  { %257 = vmatpush.xpose.msk.msra.mxu1 %vm36_vm0, %v32_v7  ;;  %275 = vmatpush.xpose.msk.msra.mxu3 %vm36_vm0, %v32_v7 }
  0x12   :  { %246 = vmatpush.xpose.msk.msra.mxu0 %vm36_vm0, %v25_v8  ;;  %270 = vmatpush.xpose.msk.msra.mxu2 %vm36_vm0, %v25_v8 }
  0x13   :  { %258 = vmatpush.xpose.msk.msra.mxu1 %vm36_vm0, %v31_v9  ;;  %276 = vmatpush.xpose.msk.msra.mxu3 %vm36_vm0, %v31_v9 }
  0x16   :  { %247 = vmatpush.xpose.msk.msra.mxu0 %vm36_vm0, %v24_v10  ;;  %271 = vmatpush.xpose.msk.msra.mxu2 %vm36_vm0, %v24_v10 }
  0x17   :  { %259 = vmatpush.xpose.msk.msra.mxu1 %vm36_vm0, %v30_v11  ;;  %277 = vmatpush.xpose.msk.msra.mxu3 %vm36_vm0, %v30_v11 }
  0x19   :  { %248 = vmatmul.msk.f32.vlgmr.msra.gmra.mxu0 %vm36_vm0, %v12_v12  ;;  %251 = vmatmul.msk.f32.vlgmr.msra.gmra.mxu2 %vm36_vm0, %v15_v13 }
  0x1a   :  { %260 = vmatmul.msk.f32.vlgmr.msra.gmra.mxu1 %vm36_vm0, %v18_v14  ;;  %263 = vmatmul.msk.f32.vlgmr.msra.gmra.mxu3 %vm36_vm0, %v21_v15 }
  0x21   :  { %249 = vmatmul.msk.f32.gmra.mxu0 %vm36_vm0, %v13_v16  ;;  %252 = vmatmul.msk.f32.gmra.mxu2 %vm36_vm0, %v16_v17 }
  0x22   :  { %261 = vmatmul.msk.f32.gmra.mxu1 %vm36_vm0, %v19_v18  ;;  %264 = vmatmul.msk.f32.gmra.mxu3 %vm36_vm0, %v22_v19 }
  0x29   :  { %250 = vmatmul.msk.f32.gmra.mxu0 %vm36_vm0, %v14_v20  ;;  %253 = vmatmul.msk.f32.gmra.mxu2 %vm36_vm0, %v17_v21 }
  0x2a   :  { %262 = vmatmul.msk.f32.gmra.mxu1 %vm36_vm0, %v20_v22  ;;  %265 = vmatmul.msk.f32.gmra.mxu3 %vm36_vm0, %v23_v23 }
  0x96   :  { %v90_v24 = vpop.f32.mrf.mxu0 }
  0x97   :  { %v161_v25 = vpop.f32.mrf.mxu1  ;;  %v179_v31 = vmul.f32 %v90_v24, %v90_v24 }
  0x98   :  { %v185_v47 = vmul.f32 %v161_v25, %v161_v25 }
  0x99   :  { %v192_v35 = vsel %vm191_vm1, %v179_v31, 0.0 }
  0x9a   :  { %v203_v55 = vsel %vm191_vm1, %v185_v47, 0.0 }
  0x9c   :  { %v99_v26 = vpop.f32.mrf.mxu2 }
  0x9d   :  { %v170_v28 = vpop.f32.mrf.mxu3  ;;  %v182_v36 = vmul.f32 %v99_v26, %v99_v26 }
  0x9e   :  { %v93_v27 = vpop.f32.mrf.mxu0  ;;  %v188_v58 = vmul.f32 %v170_v28, %v170_v28 }
  0x9f   :  { %v180_v29 = vmul.f32 %v93_v27, %v93_v27  ;;  %v164_v30 = vpop.f32.mrf.mxu1  ;;  %v197_v43 = vsel %vm191_vm1, %v182_v36, 0.0 }
  0xa0   :  { %v186_v51 = vmul.f32 %v164_v30, %v164_v30  ;;  %v209_v1 = vsel %vm191_vm1, %v188_v58, 0.0 }
  0xa1   :  { %v193_v33 = vsel %vm191_vm1, %v180_v29, 0.0 }
  0xa2   :  { %v194_v38 = vadd.f32 %v193_v33, %v192_v35  ;;  %v205_v59 = vsel %vm191_vm1, %v186_v51, 0.0 }
  0xa4   :  { %v102_v32 = vpop.f32.mrf.mxu2 }
  0xa5   :  { %v173_v39 = vpop.f32.mrf.mxu3  ;;  %v183_v40 = vmul.f32 %v102_v32, %v102_v32 }
  0xa6   :  { %v96_v34 = vpop.f32.mrf.mxu0  ;;  %v189_v62 = vmul.f32 %v173_v39, %v173_v39 }
  0xa7   :  { %v181_v37 = vmul.f32 %v96_v34, %v96_v34  ;;  %v167_v46 = vpop.f32.mrf.mxu1  ;;  %v199_v48 = vsel %vm191_vm1, %v183_v40, 0.0 }
  0xa8   :  { %v187_v53 = vmul.f32 %v167_v46, %v167_v46  ;;  %v211_v3 = vsel %vm191_vm1, %v189_v62, 0.0 }
  0xa9   :  { %v195_v41 = vsel %vm191_vm1, %v181_v37, 0.0 }
  0xaa   :  { %v196_v42 = vadd.f32 %v195_v41, %v194_v38  ;;  %v207_v60 = vsel %vm191_vm1, %v187_v53, 0.0 }
  0xac   :  { %v198_v44 = vadd.f32 %v197_v43, %v196_v42  ;;  %v105_v45 = vpop.f32.mrf.mxu2 }
  0xad   :  { %v184_v49 = vmul.f32 %v105_v45, %v105_v45  ;;  %v176_v57 = vpop.f32.mrf.mxu3 }
  0xae   :  { %v200_v50 = vadd.f32 %v199_v48, %v198_v44  ;;  %v190_v63 = vmul.f32 %v176_v57, %v176_v57 }
  0xaf   :  { %v201_v52 = vsel %vm191_vm1, %v184_v49, 0.0 }
  0xb0   :  { %v202_v54 = vadd.f32 %v201_v52, %v200_v50  ;;  %v213_v4 = vsel %vm191_vm1, %v190_v63, 0.0 }
  0xb2   :  { %v204_v56 = vadd.f32 %v203_v55, %v202_v54 }
  0xb4   :  { %v206_v61 = vadd.f32 %v205_v59, %v204_v56 }
  0xb6   :  { %v208_v0 = vadd.f32 %v207_v60, %v206_v61 }
  0xb8   :  { %v210_v2 = vadd.f32 %v209_v1, %v208_v0 }
  0xba   :  { %v212_v5 = vadd.f32 %v211_v3, %v210_v2 }
  0xbc   :  { %v214_v6 = vadd.f32 %v213_v4, %v212_v5 }
  0xbe   :  { %215 = vadd.xlane.f32.xlu0 %v214_v6 }
 0x131   :  { %v216_v7 = vpop.xlane.xlu0 %215 }
 0x132   :  { %v217_v8 = vrot.slane %v216_v7, 4 }
 0x134   :  { %v218_v9 = vadd.f32 %v217_v8, %v216_v7 }
 0x136   :  { %v219_v10 = vrot.slane %v218_v9, 2 }
 0x138   :  { %v220_v11 = vadd.f32 %v219_v10, %v218_v9 }
 0x13a   :  { %v221_v12 = vrot.slane %v220_v11, 1 }
 0x13c   :  { %v222_v13 = vadd.f32 %v221_v12, %v220_v11 }
 0x13e   :  { %278 = vpush %v222_v13 }
 0x16f   :  { %s279_s30 = spop %278 }
 0x170   :  { %s224_s3 = smul.f32 0.00043402778, %s279_s30 }
 0x172   :  { %226 = sst [smem:[#allocation2]] %s224_s3 }
 0x173   :  { %235 = dma.smem_to_hbm %s295_s4, 16, %s233_s29, [#allocation3]  }
 0x174   :  { %293 = dma.done.wait [#allocation3], 16  }
 0x175   :  { %294 = vsyncadd [#allocation3], 4294967280 }
 0x176   :  { %240 = sfence }
 0x177   :  { %241 = vsyncpa [#allocation3], 1 }

</bundles_post_ra>
